<compile_context>
chip_gen: v5e
topology: v5e:2x2
jax: 0.10.0
libtpu: 0.0.40
codegen_flags: <defaults>
</compile_context>

<pallas_src>
import numpy as np
import jax
import jax.numpy as jnp
from jax.experimental import pallas as pl
from jax.experimental.pallas import tpu as pltpu


# ---------------------------------------------------------------------------
# Parameter setup (mirrors kornia get_gaussian_kernel2d / normalize_kernel2d)
# ---------------------------------------------------------------------------
def _gaussian_kernel1d(ksize: int, sigma: float) -> np.ndarray:
    x = np.arange(ksize, dtype=np.float64) - (ksize - 1) / 2.0
    g = np.exp(-(x * x) / (2.0 * sigma * sigma))
    return g / g.sum()


def make_gaussian_taps1d(kernel_size, sigma, normalize: bool = True):
    """1-D factors (wy, wx) whose outer product equals the module's 2-D kernel."""
    kh, kw = kernel_size
    sh, sw = sigma
    gy = _gaussian_kernel1d(kh, sh)
    gx = _gaussian_kernel1d(kw, sw)
    if normalize:
        # normalize_kernel2d divides the outer product by its total sum; fold
        # that scale into gy so outer(gy, gx) == the normalized 2-D kernel.
        gy = gy / np.outer(gy, gx).sum()
    return gy, gx


def make_gaussian_kernel2d(kernel_size, sigma, normalize: bool = True) -> np.ndarray:
    kh, kw = kernel_size
    sh, sw = sigma
    k2d = np.outer(_gaussian_kernel1d(kh, sh), _gaussian_kernel1d(kw, sw))
    if normalize:
        k2d = k2d / k2d.sum()
    return k2d


def _compute_padding(kernel_size):
    # kornia _compute_padding -> (left, right, top, bottom) for F.pad
    kh, kw = kernel_size
    pad_h, pad_w = kh - 1, kw - 1
    left = pad_w // 2
    right = pad_w - left
    top = pad_h // 2
    bottom = pad_h - top
    return left, right, top, bottom


def _reflect_index(i: int, n: int) -> int:
    # PyTorch / numpy 'reflect' (edge-excluding); single reflection is enough
    # because we assert pad < dim.
    if i < 0:
        i = -i
    if i > n - 1:
        i = 2 * (n - 1) - i
    return i


def _band_matrix(n: int, taps, pad_lo: int, same: bool) -> np.ndarray:
    """Banded 1-D blur operator with the reflect border folded in.

    Returns A of shape (n_out, n) such that out = A @ x reproduces a 1-D
    cross-correlation with `taps` over x padded by reflect (same=True) or
    no padding (same=False / 'valid')."""
    k = len(taps)
    n_out = n if same else n - k + 1
    a = np.zeros((n_out, n), np.float64)
    for o in range(n_out):
        for t in range(k):
            src = o + t - (pad_lo if same else 0)
            if same:
                src = _reflect_index(src, n)
            a[o, src] += taps[t]
    return a


# ---------------------------------------------------------------------------
# VMEM budgeting / block sizing
# ---------------------------------------------------------------------------
def _vmem_budget_bytes():
    """(usable_budget, vmem_limit_bytes) derived from the chip generation."""
    try:
        cap = int(pltpu.get_tpu_info().vmem_capacity_bytes)
    except Exception:
        cap = 64 << 20          # conservative: v7x has 64 MiB per TensorCore
    cap = min(cap, 128 << 20)
    vmem_limit = min(int(cap * 0.75), 100 << 20)
    budget = int(vmem_limit * 0.8)      # headroom for compiler scratch
    return budget, vmem_limit


def _choose_plane_block(P, per_plane_bytes, fixed_bytes, budget, *,
                        multiple=1, min_steps=4):
    """Largest plane-block (a multiple of `multiple`, for sublane alignment)
    that fits the VMEM budget, keeping >= min_steps grid steps when there is
    enough work (pipelined double-buffering; both v7x TensorCores busy).
    Decoupled from divisibility of P -- the caller pads P up to the block."""
    avail = max(budget - fixed_bytes, per_plane_bytes * multiple)
    pb = int(avail // max(per_plane_bytes, 1))
    pb = max(multiple, (pb // multiple) * multiple)
    if P >= multiple * min_steps:
        cap = -(-P // min_steps)                                   # ceil
        cap = max(multiple, ((cap + multiple - 1) // multiple) * multiple)
        pb = min(pb, cap)
    p_ceil = ((P + multiple - 1) // multiple) * multiple
    return max(multiple, min(pb, p_ceil))


# ---------------------------------------------------------------------------
# Pallas kernels
# ---------------------------------------------------------------------------
def _kron_blur_kernel(x_ref, kt_ref, o_ref):
    # x: (pb, H*W) in the input dtype (lane-dense), kt: (H*W, Ho*Wo).
    # One MXU matmul; f32 accumulation; store in the output dtype.
    o_ref[...] = jnp.dot(
        x_ref[...], kt_ref[...], preferred_element_type=jnp.float32
    ).astype(o_ref.dtype)


def _separable_blur_kernel(x_ref, ay_ref, axt_ref, o_ref):
    # Fallback for large planes: x: (pb, H, W); ay: (Ho, H) f32; axt: (W, Wo).
    x = x_ref[...]
    pb = x.shape[0]
    # Horizontal pass on the MXU: contract W against the banded A_x^T.
    t = jax.lax.dot_general(
        x, axt_ref[...],
        dimension_numbers=(((2,), (0,)), ((), ())),
        preferred_element_type=jnp.float32)                 # (pb, H, Wo)
    # Vertical pass as a batched MXU matmul: A_y @ t[p] for each plane.
    ay = jnp.broadcast_to(ay_ref[...][None], (pb,) + ay_ref.shape)  # (pb, Ho, H)
    out = jax.lax.dot_general(
        ay, t,
        dimension_numbers=(((2,), (1,)), ((0,), (0,))),
        preferred_element_type=jnp.float32)                 # (pb, Ho, Wo)
    o_ref[...] = out.astype(o_ref.dtype)


# ---------------------------------------------------------------------------
# Wrapper
# ---------------------------------------------------------------------------
_MAX_KRON_OP_BYTES = 4 << 20    # use the fused (H*W, Ho*Wo) operator below this


def gaussian_blur2d(x, kernel_size, sigma, *, normalize=True,
                    border_type="reflect", padding="same"):
    """x: (B, C, H, W). Depthwise Gaussian blur, same weights for all channels."""
    B, C, H, W = x.shape
    kh, kw = kernel_size if isinstance(kernel_size, tuple) else (kernel_size,) * 2
    sig = sigma if isinstance(sigma, tuple) else (sigma, sigma)
    wy, wx = make_gaussian_taps1d((kh, kw), sig, normalize)

    if padding == "same":
        if border_type != "reflect":
            # TODO(synk): replicate/circular/constant border types not wired up.
            raise NotImplementedError(border_type)
        left, right, top, bottom = _compute_padding((kh, kw))
        assert H > max(top, bottom) and W > max(left, right), \
            "reflect padding requires pad < dim"
        ho, wo = H, W
        same = True
    elif padding == "valid":
        assert kh <= H and kw <= W, "'valid' padding requires kernel <= input"
        left = top = 0
        ho, wo = H - kh + 1, W - kw + 1
        same = False
    else:
        raise ValueError(padding)

    # Banded 1-D operators with the reflect border folded in.
    ay = _band_matrix(H, wy, top, same)      # (ho, H)
    ax = _band_matrix(W, wx, left, same)     # (wo, W)

    P = B * C
    dtype = x.dtype
    item = jnp.dtype(dtype).itemsize
    budget, vmem_limit = _vmem_budget_bytes()

    n_in, n_out = H * W, ho * wo
    op_bytes = n_in * n_out * item

    if op_bytes <= _MAX_KRON_OP_BYTES:
        # ---- fused path: out_flat = x_flat @ kron(A_y, A_x)^T (lane-dense) ----
        kt = jnp.asarray(np.kron(ay, ax).T, dtype=dtype)        # (H*W, Ho*Wo)

        # VMEM per plane: 2x in + 2x out (double buffers) + f32 matmul result.
        per_plane = 2 * n_in * item + 2 * n_out * item + n_out * 4
        fixed = 2 * op_bytes                   # operator (counted double-buffered)
        pb = _choose_plane_block(P, per_plane, fixed, budget,
                                 multiple=8, min_steps=4)
        p_pad = ((P + pb - 1) // pb) * pb
        xf = x.reshape(P, n_in)
        if p_pad != P:
            xf = jnp.pad(xf, ((0, p_pad - P), (0, 0)))
        grid = (p_pad // pb,)

        cost = pl.CostEstimate(
            flops=2 * p_pad * n_in * n_out,
            transcendentals=0,
            bytes_accessed=(p_pad * n_in + p_pad * n_out) * item + op_bytes)

        out = pl.pallas_call(
            _kron_blur_kernel,
            out_shape=jax.ShapeDtypeStruct((p_pad, n_out), dtype),
            grid=grid,
            in_specs=[pl.BlockSpec((pb, n_in), lambda i: (i, 0)),
                      pl.BlockSpec((n_in, n_out), lambda i: (0, 0))],
            out_specs=pl.BlockSpec((pb, n_out), lambda i: (i, 0)),
            compiler_params=pltpu.CompilerParams(
                dimension_semantics=("parallel",),
                vmem_limit_bytes=int(vmem_limit)),
            cost_estimate=cost,
        )(xf, kt)
        return out[:P].reshape(B, C, ho, wo)

    # ---- fallback for large planes: separable banded matmuls on the MXU ----
    # TODO(synk): for very large W the (W,W)/(H,H) band matrices are wasteful;
    # a roll+mask tap formulation tiled along W would be the next step.
    ay_j = jnp.asarray(ay, dtype=jnp.float32)                    # (ho, H)
    axt_j = jnp.asarray(ax.T, dtype=dtype)                       # (W, wo)
    per_plane = (2 * H * W * item + 2 * ho * wo * item           # in/out buffers
                 + H * wo * 4 + ho * wo * 4                      # f32 intermediates
                 + ho * H * 4)                                   # broadcast A_y
    fixed = 2 * (ho * H * 4 + W * wo * item)
    pb = _choose_plane_block(P, per_plane, fixed, budget,
                             multiple=1, min_steps=4)
    p_pad = ((P + pb - 1) // pb) * pb
    xf = x.reshape(P, H, W)
    if p_pad != P:
        xf = jnp.pad(xf, ((0, p_pad - P), (0, 0), (0, 0)))
    grid = (p_pad // pb,)

    cost = pl.CostEstimate(
        flops=2 * p_pad * (H * W * wo + ho * H * wo),
        transcendentals=0,
        bytes_accessed=(p_pad * H * W + p_pad * ho * wo) * item
                       + ho * H * 4 + W * wo * item)

    out = pl.pallas_call(
        _separable_blur_kernel,
        out_shape=jax.ShapeDtypeStruct((p_pad, ho, wo), dtype),
        grid=grid,
        in_specs=[pl.BlockSpec((pb, H, W), lambda i: (i, 0, 0)),
                  pl.BlockSpec((ho, H), lambda i: (0, 0)),
                  pl.BlockSpec((W, wo), lambda i: (0, 0))],
        out_specs=pl.BlockSpec((pb, ho, wo), lambda i: (i, 0, 0)),
        compiler_params=pltpu.CompilerParams(
            dimension_semantics=("parallel",),
            vmem_limit_bytes=int(vmem_limit)),
        cost_estimate=cost,
    )(xf, ay_j, axt_j)
    return out[:P].reshape(B, C, ho, wo)


# ---------------------------------------------------------------------------
# Host-side (numpy, float64) reference: depthwise cross-correlation with
# reflect padding — independent of the operator construction above.
# ---------------------------------------------------------------------------
def _reference_numpy(x, kernel2d, padding="same"):
    x = np.asarray(x, dtype=np.float64)
    B, C, H, W = x.shape
    kh, kw = kernel2d.shape
    if padding == "same":
        left, right, top, bottom = _compute_padding((kh, kw))
        xp = np.pad(x, ((0, 0), (0, 0), (top, bottom), (left, right)),
                    mode="reflect")
        ho, wo = H, W
    else:
        xp = x
        ho, wo = H - kh + 1, W - kw + 1
    out = np.zeros((B, C, ho, wo), np.float64)
    for dy in range(kh):
        for dx in range(kw):
            out += kernel2d[dy, dx] * xp[:, :, dy:dy + ho, dx:dx + wo]
    return out


if __name__ == "__main__":
    # Module config: kernel_size=5, sigma=1.5, channels=4, normalize=True,
    # border_type='reflect', padding='same'
    kernel_size = (5, 5)
    sigma = (1.5, 1.5)
    B, C, H, W = 2, 4, 16, 16

    key = jax.random.PRNGKey(0)
    x = jax.random.normal(key, (B, C, H, W), dtype=jnp.float32)

    out = gaussian_blur2d(x, kernel_size, sigma, normalize=True,
                          border_type="reflect", padding="same")
    out = jax.block_until_ready(out)
    assert out.shape == (B, C, H, W)

    k2d = make_gaussian_kernel2d(kernel_size, sigma, normalize=True)
    ref = _reference_numpy(np.asarray(x), k2d, padding="same")
    np.testing.assert_allclose(np.asarray(out, dtype=np.float64), ref,
                               atol=1e-4, rtol=1e-4)

    print("KERNEL_OK")
</pallas_src>

<mosaic_0001>
module attributes {stable_mosaic.version = 11 : i64} {
  func.func @_kron_blur_kernel(%arg0: i32, %arg1: memref<8x256xf32, #tpu.memory_space<vmem>>, %arg2: memref<256x256xf32, #tpu.memory_space<vmem>>, %arg3: memref<8x256xf32, #tpu.memory_space<vmem>>) attributes {dimension_semantics = [#tpu.dimension_semantics<parallel>], iteration_bounds = array<i64: 1>, scalar_prefetch = 0 : i64, scratch_operands = 0 : i64, tpu.core_type = #tpu.core_type<tc>, window_params = [{transform_indices = @transform_0, window_bounds = array<i64: 8, 256>}, {pipeline_mode = #tpu.pipeline_mode<synchronous>, transform_indices = @transform_1, window_bounds = array<i64: 256, 256>}, {transform_indices = @transform_2, window_bounds = array<i64: 8, 256>}]} {
    %c0 = arith.constant 0 : index
    %c0_0 = arith.constant 0 : index
    %0 = vector.load %arg1[%c0, %c0_0] : memref<8x256xf32, #tpu.memory_space<vmem>>, vector<8x256xf32>
    %c0_1 = arith.constant 0 : index
    %c0_2 = arith.constant 0 : index
    %1 = vector.load %arg2[%c0_1, %c0_2] : memref<256x256xf32, #tpu.memory_space<vmem>>, vector<256x256xf32>
    %cst = arith.constant dense<0.000000e+00> : vector<8x256xf32>
    %2 = tpu.matmul %0, %1, %cst {dimension_numbers = #tpu.dot_dimension_numbers<[1], [0], [0], [1], [0, 0, 1, 1], [], []>} : vector<8x256xf32>, vector<256x256xf32>, vector<8x256xf32> -> vector<8x256xf32>
    %c0_3 = arith.constant 0 : index
    %c0_4 = arith.constant 0 : index
    %3 = vector.load %arg3[%c0_3, %c0_4] : memref<8x256xf32, #tpu.memory_space<vmem>>, vector<8x256xf32>
    tpu.vector_store %arg3[%c0_3, %c0_4], %2 {strides = array<i32>} : memref<8x256xf32, #tpu.memory_space<vmem>>, vector<8x256xf32>,
    return
  }
  func.func @transform_0(%arg0: i32) -> (i32, i32) {
    %c0_i32 = arith.constant 0 : i32
    %c0_i32_0 = arith.constant 0 : i32
    return %arg0, %c0_i32 : i32, i32
  }
  func.func @transform_1(%arg0: i32) -> (i32, i32) {
    %c0_i32 = arith.constant 0 : i32
    %c0_i32_0 = arith.constant 0 : i32
    %c0_i32_1 = arith.constant 0 : i32
    return %c0_i32, %c0_i32_0 : i32, i32
  }
  func.func @transform_2(%arg0: i32) -> (i32, i32) {
    %c0_i32 = arith.constant 0 : i32
    %c0_i32_0 = arith.constant 0 : i32
    return %arg0, %c0_i32 : i32, i32
  }
}

</mosaic_0001>

<bundles_post_ra>
// kernel: tpu_custom_call.1
= control target key start
LH: loop header
LB: loop body
LE: loop exit
PB: predicated region body
PF: predicated region fallthrough
CT: control target
= control target key end

     0   :  { %7 = vsyncpa [#allocation3], 0  ;;  %s320_s0 = inlined_call_operand.hbm [shape: f32[8,256], index: 0, kind: input, shape index: {}]   ;;  %s321_s1 = inlined_call_operand.hbm [shape: f32[256,256], index: 1, kind: input, shape index: {}]   ;;  %s322_s2 = inlined_call_operand.hbm [shape: f32[8,256], index: 2, kind: output, shape index: {}]  }
   0x1   :  { %8 = vsyncpa [#allocation6], 0 }
   0x2   :  { %9 = vsyncpa [#allocation4], 0  ;;  %s15_s11 = sshll.u32 %s320_s0, 4  ;;  %s291_s12 = smov [#allocation2]   ;;  %s16_s11 = int_to_ptr.hbm [resolvable:$true] %s15_s11 }
   0x3   :  { %s17_s13 = sshll.u32 %s291_s12, 4  ;;  %s25_s16 = sshll.u32 %s321_s1, 4  ;;  %s18_s13 = int_to_ptr.vmem [resolvable:$true] %s17_s13  ;;  %s26_s16 = int_to_ptr.hbm [resolvable:$true] %s25_s16 }
   0x4   :  { %20 = dma.hbm_to_vmem [thread:$0]  %s16_s11, 256, %s18_s13, [#allocation3]  }
   0x5   :  { %s292_s17 = smov [#allocation5]   ;;  %s293_s19 = smov 256  }
   0x6   :  { %s27_s18 = sshll.u32 %s292_s17, 4  ;;  %s294_s20 = smov 16   ;;  %s28_s18 = int_to_ptr.vmem [resolvable:$true] %s27_s18 }
   0x7   :  { %33 = dma.hbm_to_vmem [thread:$0]  %s26_s16, 8192, %s28_s18, [#allocation6], %s293_s19, %s293_s19, %s294_s20  }
   0x8   :  { %285 = dma.done.wait [#allocation3], 256  }
   0x9   :  { %286 = vsyncadd [#allocation3], 4294967040 }
   0xa   :  { %287 = dma.done.wait [#allocation6], 8192  }
   0xb   :  { %288 = vsyncadd [#allocation6], 4294959104  ;;  %v75_v0 = vld [vmem:[#allocation5 + $0xf8] sm:$0xff]  ;;  %v73_v2 = vld [vmem:[#allocation5 + $0xe8] sm:$0xff]  ;;  %s295_s0 = smov [#allocation7]   ;;  %s197_s23 = sshll.u32 %s322_s2, 4  ;;  %s198_s23 = int_to_ptr.hbm [resolvable:$true] %s197_s23 }
   0xc   :  { %v107_v1 = vld [vmem:[#allocation5 + $0x1f8] sm:$0xff]  ;;  %148 = vmatpush.msra.mxu2 %v75_v0  ;;  %v105_v3 = vld [vmem:[#allocation5 + $0x1e8] sm:$0xff]  ;;  %v74_v6 = vld [vmem:[#allocation5 + $0xf0] sm:$0xff]  ;;  %s195_s1 = sshll.u32 %s295_s0, 4  ;;  %s196_s1 = int_to_ptr.vmem [resolvable:$true] %s195_s1 }
   0xd   :  { %168 = vmatpush.msra.mxu3 %v107_v1  ;;  %v71_v4 = vld [vmem:[#allocation5 + $0xd8] sm:$0xff]  ;;  %v106_v7 = vld [vmem:[#allocation5 + $0x1f0] sm:$0xff]  ;;  %v72_v8 = vld [vmem:[#allocation5 + $0xe0] sm:$0xff]  ;;  %108 = vmatpush.msra.mxu0 %v74_v6 }
   0xe   :  { %v103_v5 = vld [vmem:[#allocation5 + $0x1d8] sm:$0xff]  ;;  %149 = vmatpush.msra.mxu2 %v73_v2  ;;  %v104_v9 = vld [vmem:[#allocation5 + $0x1e0] sm:$0xff]  ;;  %128 = vmatpush.msra.mxu1 %v106_v7  ;;  %v69_v10 = vld [vmem:[#allocation5 + $0xc8] sm:$0xff] }
   0xf   :  { %169 = vmatpush.msra.mxu3 %v105_v3  ;;  %v101_v11 = vld [vmem:[#allocation5 + $0x1c8] sm:$0xff]  ;;  %v70_v12 = vld [vmem:[#allocation5 + $0xd0] sm:$0xff]  ;;  %109 = vmatpush.msra.mxu0 %v72_v8  ;;  %v67_v14 = vld [vmem:[#allocation5 + $0xb8] sm:$0xff] }
  0x10   :  { %150 = vmatpush.msra.mxu2 %v71_v4  ;;  %v102_v13 = vld [vmem:[#allocation5 + $0x1d0] sm:$0xff]  ;;  %129 = vmatpush.msra.mxu1 %v104_v9  ;;  %v99_v15 = vld [vmem:[#allocation5 + $0x1b8] sm:$0xff]  ;;  %v68_v16 = vld [vmem:[#allocation5 + $0xc0] sm:$0xff] }
  0x11   :  { %170 = vmatpush.msra.mxu3 %v103_v5  ;;  %v100_v17 = vld [vmem:[#allocation5 + $0x1c0] sm:$0xff]  ;;  %110 = vmatpush.msra.mxu0 %v70_v12  ;;  %v65_v18 = vld [vmem:[#allocation5 + $0xa8] sm:$0xff]  ;;  %v66_v20 = vld [vmem:[#allocation5 + $0xb0] sm:$0xff] }
  0x12   :  { %151 = vmatpush.msra.mxu2 %v69_v10  ;;  %130 = vmatpush.msra.mxu1 %v102_v13  ;;  %v97_v19 = vld [vmem:[#allocation5 + $0x1a8] sm:$0xff]  ;;  %v98_v21 = vld [vmem:[#allocation5 + $0x1b0] sm:$0xff]  ;;  %v63_v22 = vld [vmem:[#allocation5 + $0x98] sm:$0xff] }
  0x13   :  { %171 = vmatpush.msra.mxu3 %v101_v11  ;;  %111 = vmatpush.msra.mxu0 %v68_v16  ;;  %v95_v23 = vld [vmem:[#allocation5 + $0x198] sm:$0xff]  ;;  %v64_v24 = vld [vmem:[#allocation5 + $0xa0] sm:$0xff]  ;;  %v61_v26 = vld [vmem:[#allocation5 + $0x88] sm:$0xff] }
  0x14   :  { %152 = vmatpush.msra.mxu2 %v67_v14  ;;  %131 = vmatpush.msra.mxu1 %v100_v17  ;;  %v96_v25 = vld [vmem:[#allocation5 + $0x1a0] sm:$0xff]  ;;  %v93_v27 = vld [vmem:[#allocation5 + $0x188] sm:$0xff]  ;;  %v62_v28 = vld [vmem:[#allocation5 + $0x90] sm:$0xff] }
  0x15   :  { %172 = vmatpush.msra.mxu3 %v99_v15  ;;  %112 = vmatpush.msra.mxu0 %v66_v20  ;;  %v94_v29 = vld [vmem:[#allocation5 + $0x190] sm:$0xff]  ;;  %v59_v30 = vld [vmem:[#allocation5 + $0x78] sm:$0xff]  ;;  %v60_v32 = vld [vmem:[#allocation5 + $0x80] sm:$0xff] }
  0x16   :  { %153 = vmatpush.msra.mxu2 %v65_v18  ;;  %132 = vmatpush.msra.mxu1 %v98_v21  ;;  %v91_v31 = vld [vmem:[#allocation5 + $0x178] sm:$0xff]  ;;  %v92_v33 = vld [vmem:[#allocation5 + $0x180] sm:$0xff]  ;;  %v57_v34 = vld [vmem:[#allocation5 + $0x68] sm:$0xff] }
  0x17   :  { %173 = vmatpush.msra.mxu3 %v97_v19  ;;  %113 = vmatpush.msra.mxu0 %v64_v24  ;;  %v89_v35 = vld [vmem:[#allocation5 + $0x168] sm:$0xff]  ;;  %v58_v36 = vld [vmem:[#allocation5 + $0x70] sm:$0xff]  ;;  %v55_v38 = vld [vmem:[#allocation5 + $0x58] sm:$0xff] }
  0x18   :  { %154 = vmatpush.msra.mxu2 %v63_v22  ;;  %133 = vmatpush.msra.mxu1 %v96_v25  ;;  %v90_v37 = vld [vmem:[#allocation5 + $0x170] sm:$0xff]  ;;  %v87_v39 = vld [vmem:[#allocation5 + $0x158] sm:$0xff]  ;;  %v56_v40 = vld [vmem:[#allocation5 + $0x60] sm:$0xff] }
  0x19   :  { %174 = vmatpush.msra.mxu3 %v95_v23  ;;  %114 = vmatpush.msra.mxu0 %v62_v28  ;;  %v88_v41 = vld [vmem:[#allocation5 + $0x160] sm:$0xff]  ;;  %v53_v42 = vld [vmem:[#allocation5 + $0x48] sm:$0xff]  ;;  %v54_v44 = vld [vmem:[#allocation5 + $0x50] sm:$0xff] }
  0x1a   :  { %155 = vmatpush.msra.mxu2 %v61_v26  ;;  %134 = vmatpush.msra.mxu1 %v94_v29  ;;  %v85_v43 = vld [vmem:[#allocation5 + $0x148] sm:$0xff]  ;;  %v86_v45 = vld [vmem:[#allocation5 + $0x150] sm:$0xff]  ;;  %v51_v46 = vld [vmem:[#allocation5 + $0x38] sm:$0xff] }
  0x1b   :  { %175 = vmatpush.msra.mxu3 %v93_v27  ;;  %115 = vmatpush.msra.mxu0 %v60_v32  ;;  %v83_v47 = vld [vmem:[#allocation5 + $0x138] sm:$0xff]  ;;  %v52_v48 = vld [vmem:[#allocation5 + $0x40] sm:$0xff]  ;;  %v49_v50 = vld [vmem:[#allocation5 + $0x28] sm:$0xff] }
  0x1c   :  { %156 = vmatpush.msra.mxu2 %v59_v30  ;;  %135 = vmatpush.msra.mxu1 %v92_v33  ;;  %v84_v49 = vld [vmem:[#allocation5 + $0x140] sm:$0xff]  ;;  %v81_v51 = vld [vmem:[#allocation5 + $0x128] sm:$0xff]  ;;  %v50_v52 = vld [vmem:[#allocation5 + $0x30] sm:$0xff] }
  0x1d   :  { %176 = vmatpush.msra.mxu3 %v91_v31  ;;  %116 = vmatpush.msra.mxu0 %v58_v36  ;;  %v82_v53 = vld [vmem:[#allocation5 + $0x130] sm:$0xff]  ;;  %v47_v54 = vld [vmem:[#allocation5 + $0x18] sm:$0xff]  ;;  %v48_v56 = vld [vmem:[#allocation5 + $0x20] sm:$0xff] }
  0x1e   :  { %157 = vmatpush.msra.mxu2 %v57_v34  ;;  %136 = vmatpush.msra.mxu1 %v90_v37  ;;  %v79_v55 = vld [vmem:[#allocation5 + $0x118] sm:$0xff]  ;;  %v80_v57 = vld [vmem:[#allocation5 + $0x120] sm:$0xff]  ;;  %v45_v58 = vld [vmem:[#allocation5 + $0x8] sm:$0xff] }
  0x1f   :  { %177 = vmatpush.msra.mxu3 %v89_v35  ;;  %117 = vmatpush.msra.mxu0 %v56_v40  ;;  %v77_v59 = vld [vmem:[#allocation5 + $0x108] sm:$0xff]  ;;  %v42_v60 = vld [vmem:[#allocation2] sm:$0xff]  ;;  %v43_v61 = vld [vmem:[#allocation2 + $0x8] sm:$0xff] }
  0x20   :  { %158 = vmatpush.msra.mxu2 %v55_v38  ;;  %137 = vmatpush.msra.mxu1 %v88_v41  ;;  %v46_v62 = vld [vmem:[#allocation5 + $0x10] sm:$0xff]  ;;  %v44_v0 = vld [vmem:[#allocation5] sm:$0xff] }
  0x21   :  { %178 = vmatpush.msra.mxu3 %v87_v39  ;;  %118 = vmatpush.msra.mxu0 %v54_v44  ;;  %v78_v63 = vld [vmem:[#allocation5 + $0x110] sm:$0xff]  ;;  %v76_v1 = vld [vmem:[#allocation5 + $0x100] sm:$0xff] }
  0x22   :  { %159 = vmatpush.msra.mxu2 %v53_v42  ;;  %138 = vmatpush.msra.mxu1 %v86_v45 }
  0x23   :  { %179 = vmatpush.msra.mxu3 %v85_v43  ;;  %119 = vmatpush.msra.mxu0 %v52_v48 }
  0x24   :  { %160 = vmatpush.msra.mxu2 %v51_v46  ;;  %139 = vmatpush.msra.mxu1 %v84_v49 }
  0x25   :  { %180 = vmatpush.msra.mxu3 %v83_v47  ;;  %120 = vmatpush.msra.mxu0 %v50_v52 }
  0x26   :  { %161 = vmatpush.msra.mxu2 %v49_v50  ;;  %140 = vmatpush.msra.mxu1 %v82_v53 }
  0x27   :  { %181 = vmatpush.msra.mxu3 %v81_v51  ;;  %121 = vmatpush.msra.mxu0 %v48_v56 }
  0x28   :  { %162 = vmatpush.msra.mxu2 %v47_v54  ;;  %141 = vmatpush.msra.mxu1 %v80_v57 }
  0x29   :  { %182 = vmatpush.msra.mxu3 %v79_v55  ;;  %122 = vmatpush.msra.mxu0 %v46_v62 }
  0x2a   :  { %163 = vmatpush.msra.mxu2 %v45_v58  ;;  %142 = vmatpush.msra.mxu1 %v78_v63 }
  0x2b   :  { %183 = vmatpush.msra.mxu3 %v77_v59  ;;  %164 = vmatmul.f32.vlgmr.msra.gmra.mxu2 %v42_v60 }
  0x2c   :  { %184 = vmatmul.f32.vlgmr.msra.gmra.mxu3 %v43_v61  ;;  %123 = vmatpush.msra.mxu0 %v44_v0 }
  0x2d   :  { %143 = vmatpush.msra.mxu1 %v76_v1  ;;  %124 = vmatmul.f32.vlgmr.msra.gmra.mxu0 %v42_v60 }
  0x2e   :  { %144 = vmatmul.f32.vlgmr.msra.gmra.mxu1 %v43_v61 }
  0xaa   :  { %v125_v2 = vpop.f32.mrf.mxu0 }
  0xab   :  { %v145_v3 = vpop.f32.mrf.mxu1 }
  0xac   :  { %v146_v4 = vadd.f32 %v145_v3, %v125_v2 }
  0xae   :  { %v165_v5 = vpop.f32.mrf.mxu2  ;;  %188 = vst [vmem:[#allocation7] sm:$0xff] %v146_v4 }
  0xaf   :  { %v185_v6 = vpop.f32.mrf.mxu3 }
  0xb0   :  { %v186_v7 = vadd.f32 %v185_v6, %v165_v5 }
  0xb2   :  { %189 = vst [vmem:[#allocation7 + $0x8] sm:$0xff] %v186_v7 }
  0xb3   :  { %200 = dma.vmem_to_hbm [thread:$0]  %s196_s1, 256, %s198_s23, [#allocation4]  }
  0xb4   :  { %289 = dma.done.wait [#allocation4], 256  }
  0xb5   :  { %290 = vsyncadd [#allocation4], 4294967040 }
  0xb6   :  { %205 = vsyncpa [#allocation3], 1 }
  0xb7   :  { %206 = vsyncpa [#allocation6], 1 }
  0xb8   :  { %207 = vsyncpa [#allocation4], 1 }

</bundles_post_ra>
